<compile_context>
chip_gen: v5e
topology: v5e:2x2
jax: 0.10.0
libtpu: 0.0.40
codegen_flags: <defaults>
</compile_context>

<pallas_src>
import functools

import jax
import jax.numpy as jnp
from jax import lax
from jax.experimental import pallas as pl
from jax.experimental.pallas import tpu as pltpu


# -----------------------------------------------------------------------------
# Pallas kernels (whole batch per invocation; weights pre-oriented by wrappers)
# -----------------------------------------------------------------------------
def ner_kernel(x_ref, w_ref, b_ref, o_ref):
    # x_ref: (B, L, 2H)   w_ref: (2H, T)  [already transposed]   b_ref: (1, T)
    # o_ref: (B, L, T)
    B, L, D = x_ref.shape
    T = w_ref.shape[1]
    x = x_ref[...].reshape(B * L, D)                              # sublane merge only
    y = jnp.dot(x, w_ref[...], preferred_element_type=jnp.float32) + b_ref[...]
    o_ref[...] = y.reshape(B, L, T)


def biaffine_pred_kernel(threshold_rel, x_ref, wproj_ref, wuv2_ref, bias_ref,
                         relt_ref, o_ref):
    # Fused biaffine relation scorer + sigmoid/threshold.
    #   x_ref:     (B, L, F)      rel_input,  F = 2H + token_type_dim
    #   wproj_ref: (F, 2R)        [Wu.T | Wv.T]                 (fused u/v projection)
    #   wuv2_ref:  (2R, 2R)       blockdiag(Wuv[:,:R].T, Wuv[:,R:].T)  (fused a/b proj)
    #   bias_ref:  (2, 2R)        row 0 = [bu | bv], row 1 = [0 | buv]
    #   relt_ref:  (R, NR)        rel_embedding.T (already transposed)
    #   o_ref:     (B, L, L, NR)  int32 pred_rel
    B, L, F = x_ref.shape
    R2 = wproj_ref.shape[1]
    R = R2 // 2
    NR = relt_ref.shape[1]

    x = x_ref[...].reshape(B * L, F)

    # One fused matmul -> [u | v]  (u = selection_u(x), v = selection_v(x))
    uv_cat = jnp.dot(x, wproj_ref[...],
                     preferred_element_type=jnp.float32) + bias_ref[0:1, :]      # (BL, 2R)
    # One fused (block-diagonal) matmul -> [a | b]
    #   a_j = u_j @ Wuv[:, :R].T          (depends on j, the column index)
    #   b_i = v_i @ Wuv[:, R:].T + buv    (depends on i, the row index)
    ab = jnp.dot(uv_cat, wuv2_ref[...],
                 preferred_element_type=jnp.float32) + bias_ref[1:2, :]          # (BL, 2R)

    a = ab[:, :R].reshape(B, 1, L, R)     # broadcast over i, indexed by j
    b = ab[:, R:].reshape(B, L, 1, R)     # indexed by i, broadcast over j
    uv = jnp.tanh(a + b)                  # (B, L, L, R)  == tanh(selection_uv(cat(u_j, v_i)))

    # Single (B*L*L, R) x (R, NR) MXU contraction against relation embeddings.
    logits = jnp.dot(uv.reshape(B * L * L, R), relt_ref[...],
                     preferred_element_type=jnp.float32)                          # (BLL, NR)

    # Fused threshold (exactly round(sigmoid(x) - (thr - 0.5)) on the valid range).
    sig = 1.0 / (1.0 + jnp.exp(-logits))
    prob = sig - (threshold_rel - 0.5)
    o_ref[...] = (prob > 0.5).astype(jnp.int32).reshape(B, L, L, NR)


def ner_layer_pallas(x, w, b):
    # x: [B, L, 2H], w: [T, 2H] (PyTorch layout), b: [T]
    B, L, D = x.shape
    T = w.shape[0]
    return pl.pallas_call(
        ner_kernel,
        out_shape=jax.ShapeDtypeStruct((B, L, T), jnp.float32),
    )(x, w.T, b.reshape(1, T))            # transpose hoisted out of the kernel


def biaffine_pred_pallas(rel_input, wu, bu, wv, bv, wuv, buv, rel_w, threshold_rel):
    # rel_input: [B, L, F]; wu/wv: [R, F]; wuv: [R, 2R]; rel_w: [NR, R]
    B, L, F = rel_input.shape
    R = wu.shape[0]
    NR = rel_w.shape[0]

    # All weight re-orientation / fusion done once here (not per kernel step).
    w_proj = jnp.concatenate([wu.T, wv.T], axis=1)                          # (F, 2R)
    zeros = jnp.zeros((R, R), dtype=wuv.dtype)
    w_uv2 = jnp.block([[wuv[:, :R].T, zeros],
                       [zeros, wuv[:, R:].T]])                              # (2R, 2R)
    biases = jnp.stack([jnp.concatenate([bu, bv]),
                        jnp.concatenate([jnp.zeros((R,), buv.dtype), buv])])  # (2, 2R)
    rel_t = rel_w.T                                                         # (R, NR)

    kernel = functools.partial(biaffine_pred_kernel, float(threshold_rel))
    # TODO(synk): for large L / NR (e.g. v7x 64 MiB VMEM) tile the i-row axis with a
    # grid instead of one whole-(B,L,L,NR) block; unnecessary at these sizes.
    return pl.pallas_call(
        kernel,
        out_shape=jax.ShapeDtypeStruct((B, L, L, NR), jnp.int32),
    )(rel_input, w_proj, w_uv2, biases, rel_t)


# -----------------------------------------------------------------------------
# Plain-JAX glue: embeddings, BiGRU recurrence, CRF Viterbi decode
# -----------------------------------------------------------------------------
def gru_direction(x, h0, w_ih, w_hh, b_ih, b_hh, reverse):
    # x: [B, L, E], h0: [B, H] -- PyTorch GRU gate equations.
    # Input-gate projections hoisted out of the scan: one batched matmul.
    gi_all = x @ w_ih.T + b_ih                       # [B, L, 3H]
    gi_seq = jnp.swapaxes(gi_all, 0, 1)              # [L, B, 3H]
    if reverse:
        gi_seq = gi_seq[::-1]

    def step(h, gi):
        gh = h @ w_hh.T + b_hh
        i_r, i_z, i_n = jnp.split(gi, 3, axis=-1)
        h_r, h_z, h_n = jnp.split(gh, 3, axis=-1)
        r = jax.nn.sigmoid(i_r + h_r)
        z = jax.nn.sigmoid(i_z + h_z)
        n = jnp.tanh(i_n + r * h_n)
        h_new = (1.0 - z) * n + z * h
        return h_new, h_new

    h_last, hs = lax.scan(step, h0, gi_seq)
    if reverse:
        hs = hs[::-1]
    return jnp.swapaxes(hs, 0, 1), h_last            # [B, L, H], [B, H]


def crf_viterbi_decode(emissions, start, end, trans):
    # emissions: [B, L, T]; full mask (decode is called without a mask).
    B, L, T = emissions.shape
    score = start[None, :] + emissions[:, 0]         # [B, T]
    history = []
    for t in range(1, L):
        next_score = score[:, :, None] + trans[None, :, :] + emissions[:, t][:, None, :]
        history.append(jnp.argmax(next_score, axis=1))          # [B, T]
        score = jnp.max(next_score, axis=1)
    score = score + end[None, :]
    cur = jnp.argmax(score, axis=1)                  # [B]
    tags = [cur]
    for idx in reversed(history):
        cur = jnp.take_along_axis(idx, cur[:, None], axis=1)[:, 0]
        tags.append(cur)
    return jnp.stack(tags[::-1], axis=1)             # [B, L]


# -----------------------------------------------------------------------------
# Forward pass (is_test=True branch of JointModel.forward)
# -----------------------------------------------------------------------------
@functools.partial(jax.jit, static_argnames=("threshold_rel",))
def joint_model_forward(params, text_tokened, hidden_init, threshold_rel=0.5):
    emb = jnp.take(params["word_embedding"], text_tokened, axis=0)       # [B, L, E]
    # TODO(synk): dropout_embedding is disabled (use_dropout=False / eval mode).

    out_f, _ = gru_direction(emb, hidden_init[0], params["gru_w_ih_f"],
                             params["gru_w_hh_f"], params["gru_b_ih_f"],
                             params["gru_b_hh_f"], reverse=False)
    out_b, _ = gru_direction(emb, hidden_init[1], params["gru_w_ih_b"],
                             params["gru_w_hh_b"], params["gru_b_ih_b"],
                             params["gru_b_hh_b"], reverse=True)
    output_lstm = jnp.concatenate([out_f, out_b], axis=-1)               # [B, L, 2H]

    ner_score = ner_layer_pallas(output_lstm, params["ner_w"], params["ner_b"])

    pred_ner = crf_viterbi_decode(ner_score, params["crf_start"],
                                  params["crf_end"], params["crf_trans"])  # [B, L]

    label_emb = jnp.take(params["token_type_embedding"], pred_ner, axis=0)  # [B, L, Tt]
    rel_input = jnp.concatenate([output_lstm, label_emb], axis=-1)          # [B, L, 2H+Tt]

    pred_rel = biaffine_pred_pallas(
        rel_input,
        params["sel_u_w"], params["sel_u_b"],
        params["sel_v_w"], params["sel_v_b"],
        params["sel_uv_w"], params["sel_uv_b"],
        params["rel_embedding"],
        threshold_rel,
    )                                                                        # [B, L, L, NR] int32
    return pred_ner, pred_rel


# -----------------------------------------------------------------------------
# Deterministic parameter construction + run
# -----------------------------------------------------------------------------
def make_params(key, cfg):
    V, E = cfg["vocab_size"], cfg["embedding_dim"]
    H = cfg["hidden_dim_lstm"]
    T = cfg["num_token_type"]
    Tt = cfg["token_type_dim"]
    NR = cfg["num_relations"]
    R = cfg["rel_emb_size"]
    F = 2 * H + Tt

    keys = jax.random.split(key, 24)
    u = lambda k, shape, s=0.1: jax.random.uniform(k, shape, jnp.float32, -s, s)

    word_emb = jax.random.normal(keys[0], (V, E), jnp.float32) * 0.1
    word_emb = word_emb.at[cfg["pad_token_id"]].set(0.0)   # padding_idx row zeroed

    params = {
        "word_embedding": word_emb,
        "token_type_embedding": jax.random.normal(keys[1], (T, Tt), jnp.float32) * 0.1,
        "rel_embedding": jax.random.normal(keys[2], (NR, R), jnp.float32) * 0.1,
        # Bi-GRU, single layer
        "gru_w_ih_f": u(keys[3], (3 * H, E)), "gru_w_hh_f": u(keys[4], (3 * H, H)),
        "gru_b_ih_f": u(keys[5], (3 * H,)),   "gru_b_hh_f": u(keys[6], (3 * H,)),
        "gru_w_ih_b": u(keys[7], (3 * H, E)), "gru_w_hh_b": u(keys[8], (3 * H, H)),
        "gru_b_ih_b": u(keys[9], (3 * H,)),   "gru_b_hh_b": u(keys[10], (3 * H,)),
        # ner_layer: Linear(2H, T)
        "ner_w": u(keys[11], (T, 2 * H)), "ner_b": u(keys[12], (T,)),
        # CRF parameters (torchcrf init: uniform(-0.1, 0.1))
        "crf_start": u(keys[13], (T,)), "crf_end": u(keys[14], (T,)),
        "crf_trans": u(keys[15], (T, T)),
        # selection_u / selection_v: Linear(2H+Tt, R)
        "sel_u_w": u(keys[16], (R, F)), "sel_u_b": u(keys[17], (R,)),
        "sel_v_w": u(keys[18], (R, F)), "sel_v_b": u(keys[19], (R,)),
        # selection_uv: Linear(2R, R)
        "sel_uv_w": u(keys[20], (R, 2 * R)), "sel_uv_b": u(keys[21], (R,)),
    }
    return params


if __name__ == "__main__":
    cfg = dict(
        vocab_size=50, embedding_dim=16, hidden_dim_lstm=16, num_layers=1,
        num_token_type=5, token_type_dim=8, num_relations=4, rel_emb_size=16,
        pad_token_id=0, threshold_rel=0.5,
    )
    B, L = 2, 8

    root = jax.random.PRNGKey(0)
    k_param, k_tok, k_hid = jax.random.split(root, 3)

    params = make_params(k_param, cfg)
    text_tokened = jax.random.randint(k_tok, (B, L), 1, cfg["vocab_size"], dtype=jnp.int32)
    # mirrors `hidden_init = torch.randn(2 * num_layers, batch, hidden_dim)`,
    # but drawn from a fixed PRNG key for determinism.
    hidden_init = jax.random.normal(k_hid, (2 * cfg["num_layers"], B, cfg["hidden_dim_lstm"]),
                                    jnp.float32)

    pred_ner, pred_rel = joint_model_forward(params, text_tokened, hidden_init,
                                             threshold_rel=cfg["threshold_rel"])
    jax.block_until_ready(pred_ner)
    jax.block_until_ready(pred_rel)

    assert pred_ner.shape == (B, L)
    assert pred_rel.shape == (B, L, L, cfg["num_relations"])
    assert pred_rel.dtype == jnp.int32
    print("KERNEL_OK")
</pallas_src>

<mosaic_0001>
module attributes {stable_mosaic.version = 11 : i64} {
  func.func @ner_kernel(%arg0: memref<2x8x32xf32, #tpu.memory_space<vmem>>, %arg1: memref<32x5xf32, #tpu.memory_space<vmem>>, %arg2: memref<1x5xf32, #tpu.memory_space<vmem>>, %arg3: memref<2x8x5xf32, #tpu.memory_space<vmem>>) attributes {dimension_semantics = [], scalar_prefetch = 0 : i64, scratch_operands = 0 : i64, tpu.core_type = #tpu.core_type<tc>} {
    %c0 = arith.constant 0 : index
    %c0_0 = arith.constant 0 : index
    %c0_1 = arith.constant 0 : index
    %0 = vector.load %arg0[%c0, %c0_0, %c0_1] : memref<2x8x32xf32, #tpu.memory_space<vmem>>, vector<2x8x32xf32>
    %1 = vector.shape_cast %0 : vector<2x8x32xf32> to vector<16x32xf32>
    %c0_2 = arith.constant 0 : index
    %c0_3 = arith.constant 0 : index
    %2 = vector.load %arg1[%c0_2, %c0_3] : memref<32x5xf32, #tpu.memory_space<vmem>>, vector<32x5xf32>
    %cst = arith.constant dense<0.000000e+00> : vector<16x5xf32>
    %3 = tpu.matmul %1, %2, %cst {dimension_numbers = #tpu.dot_dimension_numbers<[1], [0], [0], [1], [0, 0, 1, 1], [], []>} : vector<16x32xf32>, vector<32x5xf32>, vector<16x5xf32> -> vector<16x5xf32>
    %c0_4 = arith.constant 0 : index
    %c0_5 = arith.constant 0 : index
    %4 = vector.load %arg2[%c0_4, %c0_5] : memref<1x5xf32, #tpu.memory_space<vmem>>, vector<1x5xf32>
    %5 = vector.broadcast %4 : vector<1x5xf32> to vector<16x5xf32>
    %6 = arith.addf %3, %5 : vector<16x5xf32>
    %7 = vector.shape_cast %6 : vector<16x5xf32> to vector<2x8x5xf32>
    %c0_6 = arith.constant 0 : index
    %c0_7 = arith.constant 0 : index
    %c0_8 = arith.constant 0 : index
    %8 = vector.load %arg3[%c0_6, %c0_7, %c0_8] : memref<2x8x5xf32, #tpu.memory_space<vmem>>, vector<2x8x5xf32>
    tpu.vector_store %arg3[%c0_6, %c0_7, %c0_8], %7 {strides = array<i32>} : memref<2x8x5xf32, #tpu.memory_space<vmem>>, vector<2x8x5xf32>,
    return
  }
}

module attributes {stable_mosaic.version = 11 : i64} {
  func.func @biaffine_pred_kernel(%arg0: memref<2x8x40xf32, #tpu.memory_space<vmem>>, %arg1: memref<40x32xf32, #tpu.memory_space<vmem>>, %arg2: memref<32x32xf32, #tpu.memory_space<vmem>>, %arg3: memref<2x32xf32, #tpu.memory_space<vmem>>, %arg4: memref<16x4xf32, #tpu.memory_space<vmem>>, %arg5: memref<2x8x8x4xi32, #tpu.memory_space<vmem>>) attributes {dimension_semantics = [], scalar_prefetch = 0 : i64, scratch_operands = 0 : i64, tpu.core_type = #tpu.core_type<tc>} {
    %c0 = arith.constant 0 : index
    %c0_0 = arith.constant 0 : index
    %c0_1 = arith.constant 0 : index
    %0 = vector.load %arg0[%c0, %c0_0, %c0_1] : memref<2x8x40xf32, #tpu.memory_space<vmem>>, vector<2x8x40xf32>
    %1 = vector.shape_cast %0 : vector<2x8x40xf32> to vector<16x40xf32>
    %c0_2 = arith.constant 0 : index
    %c0_3 = arith.constant 0 : index
    %2 = vector.load %arg1[%c0_2, %c0_3] : memref<40x32xf32, #tpu.memory_space<vmem>>, vector<40x32xf32>
    %cst = arith.constant dense<0.000000e+00> : vector<16x32xf32>
    %3 = tpu.matmul %1, %2, %cst {dimension_numbers = #tpu.dot_dimension_numbers<[1], [0], [0], [1], [0, 0, 1, 1], [], []>} : vector<16x40xf32>, vector<40x32xf32>, vector<16x32xf32> -> vector<16x32xf32>
    %c0_4 = arith.constant 0 : index
    %c0_5 = arith.constant 0 : index
    %4 = vector.load %arg3[%c0_4, %c0_5] : memref<2x32xf32, #tpu.memory_space<vmem>>, vector<1x32xf32>
    %5 = vector.broadcast %4 : vector<1x32xf32> to vector<16x32xf32>
    %6 = arith.addf %3, %5 : vector<16x32xf32>
    %c0_6 = arith.constant 0 : index
    %c0_7 = arith.constant 0 : index
    %7 = vector.load %arg2[%c0_6, %c0_7] : memref<32x32xf32, #tpu.memory_space<vmem>>, vector<32x32xf32>
    %cst_8 = arith.constant dense<0.000000e+00> : vector<16x32xf32>
    %8 = tpu.matmul %6, %7, %cst_8 {dimension_numbers = #tpu.dot_dimension_numbers<[1], [0], [0], [1], [0, 0, 1, 1], [], []>} : vector<16x32xf32>, vector<32x32xf32>, vector<16x32xf32> -> vector<16x32xf32>
    %c1 = arith.constant 1 : index
    %c0_9 = arith.constant 0 : index
    %9 = vector.load %arg3[%c1, %c0_9] : memref<2x32xf32, #tpu.memory_space<vmem>>, vector<1x32xf32>
    %10 = vector.broadcast %9 : vector<1x32xf32> to vector<16x32xf32>
    %11 = arith.addf %8, %10 : vector<16x32xf32>
    %12 = vector.extract_strided_slice %11 {offsets = [0, 0], sizes = [16, 16], strides = [1, 1]} : vector<16x32xf32> to vector<16x16xf32>
    %13 = vector.shape_cast %12 : vector<16x16xf32> to vector<2x1x8x16xf32>
    %14 = vector.extract_strided_slice %11 {offsets = [0, 16], sizes = [16, 16], strides = [1, 1]} : vector<16x32xf32> to vector<16x16xf32>
    %15 = vector.shape_cast %14 : vector<16x16xf32> to vector<2x8x1x16xf32>
    %16 = vector.broadcast %13 : vector<2x1x8x16xf32> to vector<2x8x8x16xf32>
    %17 = vector.broadcast %15 : vector<2x8x1x16xf32> to vector<2x8x8x16xf32>
    %18 = arith.addf %16, %17 : vector<2x8x8x16xf32>
    %19 = math.tanh %18 : vector<2x8x8x16xf32>
    %20 = vector.shape_cast %19 : vector<2x8x8x16xf32> to vector<128x16xf32>
    %c0_10 = arith.constant 0 : index
    %c0_11 = arith.constant 0 : index
    %21 = vector.load %arg4[%c0_10, %c0_11] : memref<16x4xf32, #tpu.memory_space<vmem>>, vector<16x4xf32>
    %cst_12 = arith.constant dense<0.000000e+00> : vector<128x4xf32>
    %22 = tpu.matmul %20, %21, %cst_12 {dimension_numbers = #tpu.dot_dimension_numbers<[1], [0], [0], [1], [0, 0, 1, 1], [], []>} : vector<128x16xf32>, vector<16x4xf32>, vector<128x4xf32> -> vector<128x4xf32>
    %cst_13 = arith.constant 0.000000e+00 : f32
    %23 = vector.broadcast %cst_13 : f32 to vector<128x4xf32>
    %24 = arith.subf %23, %22 : vector<128x4xf32>
    %25 = math.exp %24 : vector<128x4xf32>
    %cst_14 = arith.constant 1.000000e+00 : f32
    %26 = vector.broadcast %cst_14 : f32 to vector<128x4xf32>
    %27 = arith.addf %26, %25 : vector<128x4xf32>
    %cst_15 = arith.constant 1.000000e+00 : f32
    %28 = vector.broadcast %cst_15 : f32 to vector<128x4xf32>
    %29 = arith.divf %28, %27 : vector<128x4xf32>
    %cst_16 = arith.constant 0.000000e+00 : f32
    %30 = vector.broadcast %cst_16 : f32 to vector<128x4xf32>
    %31 = arith.subf %29, %30 : vector<128x4xf32>
    %cst_17 = arith.constant 5.000000e-01 : f32
    %32 = vector.broadcast %cst_17 : f32 to vector<128x4xf32>
    %33 = arith.cmpf ogt, %31, %32 : vector<128x4xf32>
    %34 = arith.extui %33 : vector<128x4xi1> to vector<128x4xi32>
    %35 = vector.shape_cast %34 : vector<128x4xi32> to vector<2x8x8x4xi32>
    %c0_18 = arith.constant 0 : index
    %c0_19 = arith.constant 0 : index
    %c0_20 = arith.constant 0 : index
    %c0_21 = arith.constant 0 : index
    %36 = vector.load %arg5[%c0_18, %c0_19, %c0_20, %c0_21] : memref<2x8x8x4xi32, #tpu.memory_space<vmem>>, vector<2x8x8x4xi32>
    tpu.vector_store %arg5[%c0_18, %c0_19, %c0_20, %c0_21], %35 {strides = array<i32>} : memref<2x8x8x4xi32, #tpu.memory_space<vmem>>, vector<2x8x8x4xi32>,
    return
  }
}

</mosaic_0001>

<bundles_post_ra>
// kernel: joint_model_forward.2
= control target key start
LH: loop header
LB: loop body
LE: loop exit
PB: predicated region body
PF: predicated region fallthrough
CT: control target
= control target key end

     0   :  { %vm24_vm0 = vcmask 261120   ;;  %vm54_vm1 = vcmask 39936   ;;  %s115_s1 = inlined_call_operand.vmem [shape: f32[32,5], index: 1, kind: input, shape index: {}]   ;;  %s116_s2 = inlined_call_operand.vmem [shape: f32[1,5], index: 2, kind: input, shape index: {}]   ;;  %s117_s0 = inlined_call_operand.vmem [shape: f32[2,8,32], index: 0, kind: input, shape index: {}]   ;;  %s118_s3 = inlined_call_operand.vmem [shape: f32[2,8,5], index: 3, kind: output, shape index: {}]  }
   0x1   :  { %v19_v0 = vld [vmem:[%s115_s1 + $0x18] sm:$0xff]  ;;  %v18_v1 = vld [vmem:[%s115_s1 + $0x10] sm:$0xff]  ;;  %v17_v2 = vld [vmem:[%s115_s1 + $0x8] sm:$0xff] }
   0x2   :  { %43 = vmatpush.msra.mxu0 %v19_v0  ;;  %63 = vmatpush.msra.mxu1 %v19_v0  ;;  %v16_v3 = vld [vmem:[%s115_s1] sm:$0xff]  ;;  %v15_v5 = vld [vmem:[%s117_s0 + $0x8] sm:$0xff] }
   0x3   :  { %v14_v4 = vld [vmem:[%s117_s0] sm:$0xff] }
   0x4   :  { %44 = vmatpush.msra.mxu0 %v18_v1  ;;  %64 = vmatpush.msra.mxu1 %v18_v1  ;;  %v67_v6 = vld [vmem:[%s116_s2] ss:$0 sm:$0xff] }
   0x6   :  { %45 = vmatpush.msra.mxu0 %v17_v2  ;;  %65 = vmatpush.msra.mxu1 %v17_v2 }
   0x8   :  { %46 = vmatpush.msra.mxu0 %v16_v3  ;;  %66 = vmatpush.msra.mxu1 %v16_v3 }
   0x9   :  { %61 = vmatmul.msk.f32.vlgmr.msra.gmra.mxu0 %vm24_vm0, %v14_v4  ;;  %62 = vmatmul.msk.f32.vlgmr.msra.gmra.mxu1 %vm24_vm0, %v15_v5 }
  0x86   :  { %v48_v7 = vpop.f32.mrf.mxu0  ;;  %v51_v8 = vpop.f32.mrf.mxu1 }
  0x87   :  { %v49_v9 = vadd.f32 %v67_v6, %v48_v7  ;;  %v52_v10 = vadd.f32 %v67_v6, %v51_v8 }
  0x89   :  { %55 = vst.msk [vmem:[%s118_s3] sm:$0xff] %vm54_vm1, %v49_v9 }
  0x8a   :  { %56 = vst.msk [vmem:[%s118_s3 + $0x8] sm:$0xff] %vm54_vm1, %v52_v10 }

// kernel: joint_model_forward.3
= control target key start
LH: loop header
LB: loop body
LE: loop exit
PB: predicated region body
PF: predicated region fallthrough
CT: control target
= control target key end

     0   :  { %vm29_vm0 = vcmask 326656   ;;  %vm65_vm1 = vcmask 261120   ;;  %vm209_vm2 = vcmask 130048   ;;  %vm659_vm4 = vcmask 31744   ;;  %s1237_s1 = inlined_call_operand.vmem [shape: f32[40,32], index: 1, kind: input, shape index: {}]   ;;  %s1238_s3 = inlined_call_operand.vmem [shape: f32[2,32], index: 3, kind: input, shape index: {}]   ;;  %s1239_s0 = inlined_call_operand.vmem [shape: f32[2,8,40], index: 0, kind: input, shape index: {}]   ;;  %s1240_s2 = inlined_call_operand.vmem [shape: f32[32,32], index: 2, kind: input, shape index: {}]   ;;  %s1241_s4 = inlined_call_operand.vmem [shape: f32[16,4], index: 4, kind: input, shape index: {}]   ;;  %s1242_s5 = inlined_call_operand.vmem [shape: s32[2,8,8,4], index: 5, kind: output, shape index: {}]  }
   0x1   :  { %v26_v0 = vld [vmem:[%s1237_s1 + $0x20] sm:$0xff]  ;;  %v25_v1 = vld [vmem:[%s1237_s1 + $0x18] sm:$0xff]  ;;  %v24_v2 = vld [vmem:[%s1237_s1 + $0x10] sm:$0xff] }
   0x2   :  { %47 = vmatpush.msra.mxu0 %v26_v0  ;;  %v23_v3 = vld [vmem:[%s1237_s1 + $0x8] sm:$0xff]  ;;  %v22_v4 = vld [vmem:[%s1237_s1] sm:$0xff]  ;;  %v62_v6 = vld [vmem:[%s1240_s2 + $0x18] sm:$0xff] }
   0x3   :  { %v20_v5 = vld [vmem:[%s1239_s0] sm:$0xff]  ;;  %v61_v7 = vld [vmem:[%s1240_s2 + $0x10] sm:$0xff]  ;;  %v60_v8 = vld [vmem:[%s1240_s2 + $0x8] sm:$0xff] }
   0x4   :  { %48 = vmatpush.msra.mxu0 %v25_v1  ;;  %v59_v9 = vld [vmem:[%s1240_s2] sm:$0xff]  ;;  %v21_v10 = vld [vmem:[%s1239_s0 + $0x8] sm:$0xff]  ;;  %s804_s0 = smov 112  }
   0x5   :  { %v706_v11 = vld [vmem:[%s1238_s3] ss:$0 sm:$0xff]  ;;  %v707_v16 = vld [vmem:[%s1238_s3 + $0x1] ss:$0 sm:$0xff]  ;;  %v208_v51 = vld [vmem:[%s1241_s4 + $0x8] sm:$0xff] }
   0x6   :  { %49 = vmatpush.msra.mxu0 %v24_v2  ;;  %700 = vmatpush.msra.mxu2 %v208_v51  ;;  %v207_v52 = vld [vmem:[%s1241_s4] sm:$0xff] }
   0x7   :  { %701 = vmatpush.msra.mxu3 %v208_v51  ;;  %272 = vmatpush.msra.mxu1 %v208_v51 }
   0x8   :  { %50 = vmatpush.msra.mxu0 %v23_v3  ;;  %702 = vmatpush.msra.mxu2 %v207_v52 }
   0x9   :  { %703 = vmatpush.msra.mxu3 %v207_v52  ;;  %273 = vmatpush.msra.mxu1 %v207_v52 }
   0xa   :  { %51 = vmatpush.msra.mxu0 %v22_v4 }
   0xb   :  { %680 = vmatmul.msk.f32.vlgmr.msra.gmra.mxu0 %vm29_vm0, %v20_v5 }
   0xc   :  { %84 = vmatpush.msrb.mxu0 %v62_v6 }
   0xe   :  { %85 = vmatpush.msrb.mxu0 %v61_v7 }
  0x10   :  { %86 = vmatpush.msrb.mxu0 %v60_v8 }
  0x12   :  { %87 = vmatpush.msrb.mxu0 %v59_v9 }
  0x13   :  { %681 = vmatmul.msk.f32.gmra.mxu0 %vm29_vm0, %v21_v10 }
  0x88   :  { %v53_v12 = vpop.f32.mrf.mxu0 }
  0x89   :  { %v54_v13 = vadd.f32 %v706_v11, %v53_v12 }
  0x8b   :  { %682 = vmatmul.msk.f32.vlgmr.msrb.gmra.mxu0 %vm65_vm1, %v54_v13 }
  0x90   :  { %v56_v14 = vpop.f32.mrf.mxu0 }
  0x91   :  { %v57_v15 = vadd.f32 %v706_v11, %v56_v14 }
  0x93   :  { %683 = vmatmul.msk.f32.gmra.mxu0 %vm65_vm1, %v57_v15 }
 0x108   :  { %v89_v17 = vpop.f32.mrf.mxu0 }
 0x109   :  { %v875_v18 = vadd.f32 %v707_v16, %v89_v17 }
 0x10b   :  { %v102_v19 = vrot.slane %v875_v18, 6  ;;  %v101_v20 = vrot.slane %v875_v18, 5  ;;  %v100_v21 = vrot.slane %v875_v18, 4  ;;  %v103_v34 = vrot.slane %v875_v18, 7 }
 0x10c   :  { %v111_v37 = vperm.slane %v875_v18, 0  ;;  %v97_v39 = vrot.slane %v875_v18, 1  ;;  %v98_v45 = vrot.slane %v875_v18, 2  ;;  %v99_v49 = vrot.slane %v875_v18, 3 }
 0x10d   :  { %v117_v22 = vperm.slane %v102_v19, 0  ;;  %v116_v23 = vperm.slane %v101_v20, 0  ;;  %v115_v24 = vperm.slane %v100_v21, 0  ;;  %v118_v36 = vperm.slane %v103_v34, 0 }
 0x10e   :  { %v112_v42 = vperm.slane %v97_v39, 0  ;;  %v113_v48 = vperm.slane %v98_v45, 0  ;;  %v114_v50 = vperm.slane %v99_v49, 0 }
 0x10f   :  { %139 = vrot.lane.b32.xlu2 %v117_v22, %s804_s0  ;;  %137 = vrot.lane.b32.xlu1 %v116_v23, %s804_s0 }
 0x110   :  { %135 = vrot.lane.b32.xlu0 %v115_v24, %s804_s0  ;;  %v92_v25 = vpop.f32.mrf.mxu0 }
 0x111   :  { %v883_v26 = vadd.f32 %v707_v16, %v92_v25 }
 0x113   :  { %v107_v27 = vrot.slane %v883_v26, 4  ;;  %v106_v28 = vrot.slane %v883_v26, 3  ;;  %v105_v29 = vrot.slane %v883_v26, 2  ;;  %v108_v33 = vrot.slane %v883_v26, 5 }
 0x114   :  { %v109_v38 = vrot.slane %v883_v26, 6  ;;  %v119_v41 = vperm.slane %v883_v26, 0  ;;  %v110_v43 = vrot.slane %v883_v26, 7  ;;  %v104_v44 = vrot.slane %v883_v26, 1 }
 0x115   :  { %v123_v30 = vperm.slane %v107_v27, 0  ;;  %v122_v31 = vperm.slane %v106_v28, 0  ;;  %v121_v32 = vperm.slane %v105_v29, 0  ;;  %v124_v35 = vperm.slane %v108_v33, 0 }
 0x116   :  { %v125_v40 = vperm.slane %v109_v38, 0  ;;  %v126_v46 = vperm.slane %v110_v43, 0  ;;  %v120_v47 = vperm.slane %v104_v44, 0 }
 0x117   :  { %151 = vrot.lane.b32.xlu2 %v123_v30, %s804_s0  ;;  %149 = vrot.lane.b32.xlu1 %v122_v31, %s804_s0 }
 0x118   :  { %147 = vrot.lane.b32.xlu0 %v121_v32, %s804_s0 }
 0x11f   :  { %153 = vrot.lane.b32.xlu2 %v124_v35, %s804_s0  ;;  %141 = vrot.lane.b32.xlu1 %v118_v36, %s804_s0 }
 0x120   :  { %127 = vrot.lane.b32.xlu0 %v111_v37, %s804_s0 }
 0x127   :  { %155 = vrot.lane.b32.xlu2 %v125_v40, %s804_s0  ;;  %143 = vrot.lane.b32.xlu1 %v119_v41, %s804_s0 }
 0x128   :  { %129 = vrot.lane.b32.xlu0 %v112_v42, %s804_s0 }
 0x12f   :  { %157 = vrot.lane.b32.xlu2 %v126_v46, %s804_s0  ;;  %145 = vrot.lane.b32.xlu1 %v120_v47, %s804_s0 }
 0x130   :  { %131 = vrot.lane.b32.xlu0 %v113_v48, %s804_s0 }
 0x138   :  { %133 = vrot.lane.b32.xlu0 %v114_v50, %s804_s0 }
 0x169   :  { %v140_v56 = vpop.permute.xlu2 %139 }
 0x16a   :  { %v181_v62 = vadd.f32 %v140_v56, %v875_v18 }
 0x171   :  { %v152_v63 = vpop.permute.xlu2 %151 }
 0x172   :  { %v187_v6 = vadd.f32 %v152_v63, %v883_v26 }
 0x179   :  { %v154_v11 = vpop.permute.xlu2 %153 }
 0x17a   :  { %v188_v15 = vadd.f32 %v154_v11, %v883_v26 }
 0x181   :  { %v138_v53 = vpop.permute.xlu1 %137  ;;  %v156_v23 = vpop.permute.xlu2 %155 }
 0x182   :  { %v136_v54 = vpop.permute.xlu0 %135  ;;  %v180_v57 = vadd.f32 %v138_v53, %v875_v18  ;;  %v189_v25 = vadd.f32 %v156_v23, %v883_v26 }
 0x183   :  { %v179_v55 = vadd.f32 %v136_v54, %v875_v18 }
 0x185   :  { %708 = vtanh.f32 %v179_v55 }
 0x186   :  { %710 = vtanh.f32 %v180_v57 }
 0x189   :  { %v150_v58 = vpop.permute.xlu1 %149  ;;  %v158_v33 = vpop.permute.xlu2 %157 }
 0x18a   :  { %v148_v59 = vpop.permute.xlu0 %147  ;;  %v186_v0 = vadd.f32 %v150_v58, %v883_v26  ;;  %v190_v35 = vadd.f32 %v158_v33, %v883_v26 }
 0x18b   :  { %v185_v60 = vadd.f32 %v148_v59, %v883_v26  ;;  %v709_v61 = vpop.eup %708 }
 0x18c   :  { %688 = vmatmul.msk.f32.vlgmr.msra.gmra.mxu2 %vm209_vm2, %v709_v61  ;;  %v711_v2 = vpop.eup %710 }
 0x18d   :  { %712 = vtanh.f32 %v185_v60 }
 0x18e   :  { %714 = vtanh.f32 %v181_v62 }
 0x191   :  { %v142_v3 = vpop.permute.xlu1 %141 }
 0x192   :  { %v128_v1 = vpop.permute.xlu0 %127  ;;  %v182_v8 = vadd.f32 %v142_v3, %v875_v18 }
 0x193   :  { %v175_v4 = vadd.f32 %v128_v1, %v875_v18  ;;  %v713_v5 = vpop.eup %712 }
 0x194   :  { %689 = vmatmul.msk.f32.gmra.mxu2 %vm209_vm2, %v711_v2  ;;  %694 = vmatmul.msk.f32.vlgmr.msra.gmra.mxu3 %vm209_vm2, %v713_v5  ;;  %v715_v7 = vpop.eup %714 }
 0x195   :  { %716 = vtanh.f32 %v175_v4 }
 0x196   :  { %718 = vtanh.f32 %v186_v0 }
 0x197   :  { %720 = vtanh.f32 %v187_v6 }
 0x199   :  { %v144_v14 = vpop.permute.xlu1 %143 }
 0x19a   :  { %v130_v9 = vpop.permute.xlu0 %129  ;;  %v183_v17 = vadd.f32 %v144_v14, %v883_v26 }
 0x19b   :  { %v717_v10 = vpop.eup %716  ;;  %v176_v12 = vadd.f32 %v130_v9, %v875_v18 }
 0x19c   :  { %v719_v13 = vpop.eup %718  ;;  %684 = vmatmul.msk.f32.vlgmr.msra.gmra.mxu1 %vm209_vm2, %v717_v10  ;;  %690 = vmatmul.msk.f32.gmra.mxu2 %vm209_vm2, %v715_v7 }
 0x19d   :  { %722 = vtanh.f32 %v176_v12  ;;  %695 = vmatmul.msk.f32.gmra.mxu3 %vm209_vm2, %v719_v13  ;;  %v721_v16 = vpop.eup %720 }
 0x19e   :  { %724 = vtanh.f32 %v182_v8 }
 0x19f   :  { %726 = vtanh.f32 %v188_v15 }
 0x1a1   :  { %v146_v24 = vpop.permute.xlu1 %145 }
 0x1a2   :  { %v132_v19 = vpop.permute.xlu0 %131  ;;  %v184_v28 = vadd.f32 %v146_v24, %v883_v26 }
 0x1a3   :  { %v723_v20 = vpop.eup %722  ;;  %v177_v21 = vadd.f32 %v132_v19, %v875_v18 }
 0x1a4   :  { %v725_v22 = vpop.eup %724  ;;  %685 = vmatmul.msk.f32.gmra.mxu1 %vm209_vm2, %v723_v20 }
 0x1a5   :  { %728 = vtanh.f32 %v177_v21  ;;  %691 = vmatmul.msk.f32.gmra.mxu2 %vm209_vm2, %v725_v22  ;;  %696 = vmatmul.msk.f32.gmra.mxu3 %vm209_vm2, %v721_v16  ;;  %v727_v27 = vpop.eup %726 }
 0x1a6   :  { %730 = vtanh.f32 %v183_v17 }
 0x1a7   :  { %732 = vtanh.f32 %v189_v25 }
 0x1aa   :  { %v134_v29 = vpop.permute.xlu0 %133 }
 0x1ab   :  { %v729_v30 = vpop.eup %728  ;;  %v178_v31 = vadd.f32 %v134_v29, %v875_v18 }
 0x1ac   :  { %v731_v32 = vpop.eup %730  ;;  %686 = vmatmul.msk.f32.gmra.mxu1 %vm209_vm2, %v729_v30 }
 0x1ad   :  { %734 = vtanh.f32 %v178_v31  ;;  %692 = vmatmul.msk.f32.gmra.mxu2 %vm209_vm2, %v731_v32  ;;  %697 = vmatmul.msk.f32.gmra.mxu3 %vm209_vm2, %v727_v27  ;;  %v733_v34 = vpop.eup %732 }
 0x1ae   :  { %736 = vtanh.f32 %v184_v28 }
 0x1af   :  { %738 = vtanh.f32 %v190_v35 }
 0x1b3   :  { %v735_v36 = vpop.eup %734 }
 0x1b4   :  { %v737_v37 = vpop.eup %736  ;;  %687 = vmatmul.msk.f32.gmra.mxu1 %vm209_vm2, %v735_v36  ;;  %v805_v36 = vmov 0  }
 0x1b5   :  { %693 = vmatmul.msk.f32.gmra.mxu2 %vm209_vm2, %v737_v37  ;;  %698 = vmatmul.msk.f32.gmra.mxu3 %vm209_vm2, %v733_v34  ;;  %v739_v18 = vpop.eup %738 }
 0x1bd   :  { %699 = vmatmul.msk.f32.gmra.mxu3 %vm209_vm2, %v739_v18 }
 0x20f   :  { %v287_v38 = vpop.f32.mrf.mxu2 }
 0x210   :  { %v327_v39 = vsub.f32 0.0, %v287_v38 }
 0x212   :  { %v347_v40 = vmul.f32 1.442695, %v327_v39 }
 0x214   :  { %740 = vpow2.f32 %v347_v40 }
 0x217   :  { %v290_v41 = vpop.f32.mrf.mxu2  ;;  %v305_v42 = vpop.f32.mrf.mxu3 }
 0x218   :  { %v328_v43 = vsub.f32 0.0, %v290_v41  ;;  %v333_v26 = vsub.f32 0.0, %v305_v42 }
 0x219   :  { %v275_v44 = vpop.f32.mrf.mxu1 }
 0x21a   :  { %v323_v45 = vsub.f32 0.0, %v275_v44  ;;  %v741_v46 = vpop.eup %740  ;;  %v349_v47 = vmul.f32 1.442695, %v328_v43  ;;  %v359_v48 = vmul.f32 1.442695, %v333_v26 }
 0x21b   :  { %v375_v49 = vadd.f32 1.0, %v741_v46 }
 0x21c   :  { %v339_v50 = vmul.f32 1.442695, %v323_v45  ;;  %742 = vpow2.f32 %v349_v47 }
 0x21d   :  { %744 = vrcp.f32 %v375_v49  ;;  %v456_v2 = vand.u32 2147483647, %v375_v49  ;;  %v458_v3 = vand.u32 2147483648, %v375_v49  ;;  %vm452_vm5 = vweird.f32 %v375_v49 }
 0x21e   :  { %746 = vpow2.f32 %v359_v48 }
 0x21f   :  { %748 = vpow2.f32 %v339_v50  ;;  %v293_v51 = vpop.f32.mrf.mxu2  ;;  %vm962_vm6 = vcmp.eq.f32.partialorder %v456_v2, 8.507059e+37  ;;  %v459_v14 = vor.u32 1.1754944e-38, %v458_v3 }
 0x220   :  { %v308_v52 = vpop.f32.mrf.mxu3  ;;  %v329_v53 = vsub.f32 0.0, %v293_v51 }
 0x221   :  { %v334_v54 = vsub.f32 0.0, %v308_v52  ;;  %v278_v55 = vpop.f32.mrf.mxu1 }
 0x222   :  { %v324_v56 = vsub.f32 0.0, %v278_v55  ;;  %v743_v57 = vpop.eup %742  ;;  %v351_v58 = vmul.f32 1.442695, %v329_v53 }
 0x223   :  { %v361_v59 = vmul.f32 1.442695, %v334_v54  ;;  %v745_v60 = vpop.eup %744  ;;  %v949_v61 = vadd.f32 1.0, %v743_v57 }
 0x224   :  { %v341_v62 = vmul.f32 1.442695, %v324_v56  ;;  %v747_v63 = vpop.eup %746  ;;  %v448_v0 = vmul.f32 %v745_v60, %v375_v49  ;;  %750 = vpow2.f32 %v351_v58  ;;  %vm453_vm3 = vweird.f32 %v745_v60 }
 0x225   :  { %v749_v1 = vpop.eup %748  ;;  %752 = vrcp.f32 %v949_v61  ;;  %v952_v5 = vadd.f32 1.0, %v747_v63  ;;  %v471_v8 = vand.u32 2147483647, %v949_v61  ;;  %v473_v9 = vand.u32 2147483648, %v949_v61  ;;  %vm454_vm7 = vmor %vm452_vm5, %vm453_vm3 }
 0x226   :  { %v449_v4 = vsub.f32 1.0, %v448_v0  ;;  %v954_v6 = vadd.f32 1.0, %v749_v1  ;;  %754 = vpow2.f32 %v361_v59  ;;  %vm467_vm8 = vweird.f32 %v949_v61 }
 0x227   :  { %756 = vpow2.f32 %v341_v62  ;;  %v546_v17 = vand.u32 2147483647, %v952_v5  ;;  %v548_v19 = vand.u32 2147483648, %v952_v5  ;;  %vm975_vm9 = vcmp.eq.f32.partialorder %v471_v8, 8.507059e+37 }
 0x228   :  { %v450_v7 = vmul.f32 %v745_v60, %v449_v4  ;;  %758 = vrcp.f32 %v952_v5  ;;  %v960_v10 = vpop.f32.mrf.mxu2  ;;  %v966_v15 = vpop.f32.mrf.mxu3  ;;  %v474_v25 = vor.u32 1.1754944e-38, %v473_v9  ;;  %v396_v27 = vand.u32 2147483647, %v954_v6 }
 0x229   :  { %760 = vrcp.f32 %v954_v6  ;;  %vm542_vm10 = vweird.f32 %v952_v5  ;;  %v398_v30 = vand.u32 2147483648, %v954_v6  ;;  %vm392_vm12 = vweird.f32 %v954_v6  ;;  %v281_v50 = vpop.f32.mrf.mxu1 }
 0x22a   :  { %v751_v11 = vpop.eup %750  ;;  %v451_v12 = vadd.f32 %v745_v60, %v450_v7  ;;  %v330_v34 = vsub.f32 0.0, %v960_v10  ;;  %vm991_vm13 = vcmp.eq.f32.partialorder %v546_v17, 8.507059e+37  ;;  %v549_v39 = vor.u32 1.1754944e-38, %v548_v19 }
 0x22b   :  { %v753_v16 = vpop.eup %752  ;;  %v972_v20 = vadd.f32 1.0, %v751_v11  ;;  %vm1001_vm15 = vcmp.eq.f32.partialorder %v396_v27, 8.507059e+37  ;;  %v399_v45 = vor.u32 1.1754944e-38, %v398_v30  ;;  %v335_v46 = vsub.f32 0.0, %v966_v15 }
 0x22c   :  { %v755_v21 = vpop.eup %754  ;;  %v455_v22 = vsel %vm454_vm7, %v745_v60, %v451_v12  ;;  %v463_v23 = vmul.f32 %v753_v16, %v949_v61  ;;  %vm468_vm14 = vweird.f32 %v753_v16  ;;  %v353_v0 = vmul.f32 1.442695, %v330_v34 }
 0x22d   :  { %v757_v28 = vpop.eup %756  ;;  %v460_v29 = vsel %vm962_vm6, %v459_v14, %v455_v22  ;;  %762 = vrcp.f32 %v972_v20  ;;  %v986_v33 = vadd.f32 1.0, %v755_v21  ;;  %v488_v40 = vand.u32 2147483648, %v972_v20  ;;  %vm469_vm2 = vmor %vm467_vm8, %vm468_vm14 }
 0x22e   :  { %v759_v31 = vpop.eup %758  ;;  %vm631_vm11 = vcmp.gt.f32.partialorder %v460_v29, 0.5  ;;  %v464_v32 = vsub.f32 1.0, %v463_v23  ;;  %v486_v26 = vand.u32 2147483647, %v972_v20  ;;  %vm482_vm1 = vweird.f32 %v972_v20 }
 0x22f   :  { %v761_v35 = vpop.eup %760  ;;  %v647_v37 = vsel %vm631_vm11, 1, %v805_v36  ;;  %v538_v18 = vmul.f32 %v759_v31, %v952_v5  ;;  %764 = vrcp.f32 %v986_v33  ;;  %vm543_vm0 = vweird.f32 %v759_v31 }
 0x230   :  { %664 = vst.msk [vmem:[%s1242_s5 + $0x20] sm:$0xff] %vm659_vm4, %v647_v37  ;;  %v465_v41 = vmul.f32 %v753_v16, %v464_v32  ;;  %v388_v42 = vmul.f32 %v761_v35, %v954_v6  ;;  %v1009_v49 = vadd.f32 1.0, %v757_v28  ;;  %vm393_vm3 = vweird.f32 %v761_v35  ;;  %v1015_v55 = vpop.f32.mrf.mxu2  ;;  %v1023_v62 = vpop.f32.mrf.mxu3  ;;  %vm544_vm7 = vmor %vm542_vm10, %vm543_vm0 }
 0x231   :  { %v539_v44 = vsub.f32 1.0, %v538_v18  ;;  %v489_v53 = vor.u32 1.1754944e-38, %v488_v40  ;;  %v563_v54 = vand.u32 2147483648, %v986_v33  ;;  %vm1018_vm5 = vcmp.eq.f32.partialorder %v486_v26, 8.507059e+37  ;;  %v284_v28 = vpop.f32.mrf.mxu1 }
 0x232   :  { %v466_v47 = vadd.f32 %v753_v16, %v465_v41  ;;  %v389_v48 = vsub.f32 1.0, %v388_v42  ;;  %v561_v60 = vand.u32 2147483647, %v986_v33  ;;  %766 = vrcp.f32 %v1009_v49 }
 0x233   :  { %v763_v51 = vpop.eup %762  ;;  %v540_v52 = vmul.f32 %v759_v31, %v539_v44  ;;  %vm557_vm8 = vweird.f32 %v986_v33  ;;  %v363_v3 = vmul.f32 1.442695, %v335_v46  ;;  %v564_v9 = vor.u32 1.1754944e-38, %v563_v54 }
 0x234   :  { %v470_v56 = vsel %vm469_vm2, %v753_v16, %v466_v47  ;;  %v390_v57 = vmul.f32 %v761_v35, %v389_v48  ;;  %v478_v58 = vmul.f32 %v763_v51, %v972_v20  ;;  %vm483_vm11 = vweird.f32 %v763_v51 }
 0x235   :  { %v475_v61 = vsel %vm975_vm9, %v474_v25, %v470_v56  ;;  %v541_v63 = vadd.f32 %v759_v31, %v540_v52  ;;  %v765_v4 = vpop.eup %764  ;;  %vm394_vm9 = vmor %vm392_vm12, %vm393_vm3  ;;  %vm1043_vm10 = vcmp.eq.f32.partialorder %v561_v60, 8.507059e+37  ;;  %v411_v14 = vand.u32 2147483647, %v1009_v49 }
 0x236   :  { %vm632_vm6 = vcmp.gt.f32.partialorder %v475_v61, 0.5  ;;  %v391_v1 = vadd.f32 %v761_v35, %v390_v57  ;;  %v479_v2 = vsub.f32 1.0, %v478_v58  ;;  %v553_v12 = vmul.f32 %v765_v4, %v986_v33 }
 0x237   :  { %v648_v7 = vsel %vm632_vm6, 1, %v805_v36  ;;  %v545_v8 = vsel %vm544_vm7, %v759_v31, %v541_v63  ;;  %v413_v15 = vand.u32 2147483648, %v1009_v49  ;;  %vm558_vm0 = vweird.f32 %v765_v4 }
 0x238   :  { %665 = vst.msk [vmem:[%s1242_s5 + $0x28] sm:$0xff] %vm659_vm4, %v648_v7  ;;  %v550_v5 = vsel %vm991_vm13, %v549_v39, %v545_v8  ;;  %v395_v10 = vsel %vm394_vm9, %v761_v35, %v391_v1  ;;  %v480_v11 = vmul.f32 %v763_v51, %v479_v2  ;;  %v554_v19 = vsub.f32 1.0, %v553_v12  ;;  %v767_v21 = vpop.eup %766  ;;  %v302_v31 = vpop.f32.mrf.mxu2  ;;  %vm559_vm3 = vmor %vm557_vm8, %vm558_vm0 }
 0x239   :  { %vm637_vm14 = vcmp.gt.f32.partialorder %v550_v5, 0.5  ;;  %v400_v6 = vsel %vm1001_vm15, %v399_v45, %v395_v10  ;;  %vm407_vm13 = vweird.f32 %v1009_v49  ;;  %vm484_vm15 = vmor %vm482_vm1, %vm483_vm11  ;;  %768 = vpow2.f32 %v353_v0  ;;  %v317_v37 = vpop.f32.mrf.mxu3 }
 0x23a   :  { %v653_v16 = vsel %vm637_vm14, 1, %v805_v36  ;;  %vm627_vm12 = vcmp.gt.f32.partialorder %v400_v6, 0.5  ;;  %v481_v17 = vadd.f32 %v763_v51, %v480_v11  ;;  %v325_v23 = vsub.f32 0.0, %v281_v50 }
 0x23b   :  { %670 = vst.msk [vmem:[%s1242_s5 + $0x50] sm:$0xff] %vm659_vm4, %v653_v16  ;;  %v643_v22 = vsel %vm627_vm12, 1, %v805_v36  ;;  %v555_v25 = vmul.f32 %v765_v4, %v554_v19  ;;  %v403_v27 = vmul.f32 %v767_v21, %v1009_v49  ;;  %vm408_vm2 = vweird.f32 %v767_v21 }
 0x23c   :  { %660 = vst.msk [vmem:[%s1242_s5] sm:$0xff] %vm659_vm4, %v643_v22  ;;  %v485_v24 = vsel %vm484_vm15, %v763_v51, %v481_v17  ;;  %770 = vpow2.f32 %v363_v3  ;;  %v343_v20 = vmul.f32 1.442695, %v325_v23  ;;  %v331_v30 = vsub.f32 0.0, %v1015_v55  ;;  %vm409_vm6 = vmor %vm407_vm13, %vm408_vm2 }
 0x23d   :  { %v490_v29 = vsel %vm1018_vm5, %v489_v53, %v485_v24  ;;  %v556_v32 = vadd.f32 %v765_v4, %v555_v25  ;;  %v404_v34 = vsub.f32 1.0, %v403_v27  ;;  %v336_v35 = vsub.f32 0.0, %v1023_v62 }
 0x23e   :  { %vm633_vm1 = vcmp.gt.f32.partialorder %v490_v29, 0.5  ;;  %772 = vpow2.f32 %v343_v20  ;;  %v355_v38 = vmul.f32 1.442695, %v331_v30  ;;  %v326_v39 = vsub.f32 0.0, %v284_v28 }
 0x23f   :  { %v649_v18 = vsel %vm633_vm1, 1, %v805_v36  ;;  %v560_v40 = vsel %vm559_vm3, %v765_v4, %v556_v32  ;;  %v405_v41 = vmul.f32 %v767_v21, %v404_v34  ;;  %v365_v42 = vmul.f32 1.442695, %v336_v35  ;;  %v769_v26 = vpop.eup %768 }
 0x240   :  { %666 = vst.msk [vmem:[%s1242_s5 + $0x30] sm:$0xff] %vm659_vm4, %v649_v18  ;;  %v332_v43 = vsub.f32 0.0, %v302_v31  ;;  %v565_v44 = vsel %vm1043_vm10, %v564_v9, %v560_v40  ;;  %774 = vpow2.f32 %v355_v38  ;;  %v345_v45 = vmul.f32 1.442695, %v326_v39 }
 0x241   :  { %v337_v33 = vsub.f32 0.0, %v317_v37  ;;  %vm638_vm5 = vcmp.gt.f32.partialorder %v565_v44, 0.5  ;;  %v406_v46 = vadd.f32 %v767_v21, %v405_v41  ;;  %v1080_v47 = vadd.f32 1.0, %v769_v26  ;;  %v1116_v5 = vpop.f32.mrf.mxu3 }
 0x242   :  { %776 = vpow2.f32 %v365_v42  ;;  %v771_v48 = vpop.eup %770  ;;  %v654_v50 = vsel %vm638_vm5, 1, %v805_v36  ;;  %v414_v51 = vor.u32 1.1754944e-38, %v413_v15  ;;  %vm412_vm7 = vcmp.eq.f32.partialorder %v411_v14, 8.507059e+37 }
 0x243   :  { %778 = vpow2.f32 %v345_v45  ;;  %671 = vst.msk [vmem:[%s1242_s5 + $0x58] sm:$0xff] %vm659_vm4, %v654_v50  ;;  %v410_v52 = vsel %vm409_vm6, %v767_v21, %v406_v46  ;;  %v1091_v55 = vadd.f32 1.0, %v771_v48  ;;  %v357_v49 = vmul.f32 1.442695, %v332_v43 }
 0x244   :  { %780 = vrcp.f32 %v1080_v47  ;;  %v773_v53 = vpop.eup %772  ;;  %v415_v54 = vsel %vm412_vm7, %v414_v51, %v410_v52  ;;  %v367_v57 = vmul.f32 1.442695, %v337_v33  ;;  %v501_v60 = vand.u32 2147483647, %v1080_v47 }
 0x245   :  { %vm628_vm8 = vcmp.gt.f32.partialorder %v415_v54, 0.5  ;;  %v1093_v56 = vadd.f32 1.0, %v773_v53  ;;  %v503_v62 = vand.u32 2147483648, %v1080_v47  ;;  %782 = vrcp.f32 %v1091_v55 }
 0x246   :  { %v775_v58 = vpop.eup %774  ;;  %v644_v59 = vsel %vm628_vm8, 1, %v805_v36  ;;  %vm497_vm9 = vweird.f32 %v1080_v47  ;;  %v576_v3 = vand.u32 2147483647, %v1091_v55  ;;  %v578_v4 = vand.u32 2147483648, %v1091_v55 }
 0x247   :  { %661 = vst.msk [vmem:[%s1242_s5 + $0x8] sm:$0xff] %vm659_vm4, %v644_v59  ;;  %784 = vrcp.f32 %v1093_v56  ;;  %v1104_v0 = vadd.f32 1.0, %v775_v58  ;;  %vm1112_vm11 = vcmp.eq.f32.partialorder %v501_v60, 8.507059e+37  ;;  %v504_v9 = vor.u32 1.1754944e-38, %v503_v62 }
 0x248   :  { %v777_v61 = vpop.eup %776  ;;  %786 = vpow2.f32 %v357_v49  ;;  %v426_v10 = vand.u32 2147483647, %v1093_v56  ;;  %v428_v11 = vand.u32 2147483648, %v1093_v56  ;;  %vm572_vm10 = vweird.f32 %v1091_v55 }
 0x249   :  { %v779_v63 = vpop.eup %778  ;;  %v1106_v1 = vadd.f32 1.0, %v777_v61  ;;  %788 = vpow2.f32 %v367_v57  ;;  %vm422_vm14 = vweird.f32 %v1093_v56  ;;  %vm1127_vm12 = vcmp.eq.f32.partialorder %v576_v3, 8.507059e+37 }
 0x24a   :  { %v781_v2 = vpop.eup %780  ;;  %790 = vrcp.f32 %v1104_v0  ;;  %v1121_v12 = vadd.f32 1.0, %v779_v63  ;;  %v579_v17 = vor.u32 1.1754944e-38, %v578_v4  ;;  %v518_v19 = vand.u32 2147483648, %v1104_v0 }
 0x24b   :  { %v493_v7 = vmul.f32 %v781_v2, %v1080_v47  ;;  %v783_v13 = vpop.eup %782  ;;  %792 = vrcp.f32 %v1106_v1  ;;  %v338_v21 = vsub.f32 0.0, %v1116_v5  ;;  %vm498_vm13 = vweird.f32 %v781_v2 }
 0x24c   :  { %v568_v15 = vmul.f32 %v783_v13, %v1091_v55  ;;  %v516_v24 = vand.u32 2147483647, %v1104_v0  ;;  %vm1135_vm15 = vcmp.eq.f32.partialorder %v426_v10, 8.507059e+37  ;;  %v429_v29 = vor.u32 1.1754944e-38, %v428_v11  ;;  %vm499_vm1 = vmor %vm497_vm9, %vm498_vm13 }
 0x24d   :  { %v494_v6 = vsub.f32 1.0, %v493_v7  ;;  %v785_v14 = vpop.eup %784  ;;  %794 = vrcp.f32 %v1121_v12  ;;  %vm573_vm0 = vweird.f32 %v783_v13  ;;  %vm512_vm2 = vweird.f32 %v1104_v0 }
 0x24e   :  { %v418_v23 = vmul.f32 %v785_v14, %v1093_v56  ;;  %v787_v25 = vpop.eup %786  ;;  %v569_v27 = vsub.f32 1.0, %v568_v15  ;;  %v591_v32 = vand.u32 2147483647, %v1106_v1  ;;  %vm423_vm3 = vweird.f32 %v785_v14  ;;  %vm574_vm8 = vmor %vm572_vm10, %vm573_vm0 }
 0x24f   :  { %v495_v22 = vmul.f32 %v781_v2, %v494_v6  ;;  %v789_v20 = vpop.eup %788  ;;  %v519_v37 = vor.u32 1.1754944e-38, %v518_v19  ;;  %vm587_vm5 = vweird.f32 %v1106_v1  ;;  %v593_v18 = vand.u32 2147483648, %v1106_v1  ;;  %vm424_vm9 = vmor %vm422_vm14, %vm423_vm3 }
 0x250   :  { %v419_v31 = vsub.f32 1.0, %v418_v23  ;;  %v791_v34 = vpop.eup %790  ;;  %v570_v35 = vmul.f32 %v783_v13, %v569_v27  ;;  %vm1148_vm6 = vcmp.eq.f32.partialorder %v516_v24, 8.507059e+37  ;;  %v441_v43 = vand.u32 2147483647, %v1121_v12 }
 0x251   :  { %v496_v30 = vadd.f32 %v781_v2, %v495_v22  ;;  %v793_v38 = vpop.eup %792  ;;  %v508_v41 = vmul.f32 %v791_v34, %v1104_v0  ;;  %v1156_v33 = vadd.f32 1.0, %v787_v25  ;;  %v1161_v48 = vadd.f32 1.0, %v789_v20 }
 0x252   :  { %v420_v40 = vmul.f32 %v785_v14, %v419_v31  ;;  %v571_v44 = vadd.f32 %v783_v13, %v570_v35  ;;  %v583_v45 = vmul.f32 %v793_v38, %v1106_v1  ;;  %vm588_vm14 = vweird.f32 %v793_v38 }
 0x253   :  { %v500_v39 = vsel %vm499_vm1, %v781_v2, %v496_v30  ;;  %v509_v47 = vsub.f32 1.0, %v508_v41  ;;  %v795_v50 = vpop.eup %794  ;;  %v443_v2 = vand.u32 2147483648, %v1121_v12  ;;  %796 = vrcp.f32 %v1156_v33 }
 0x254   :  { %v505_v26 = vsel %vm1112_vm11, %v504_v9, %v500_v39  ;;  %v421_v46 = vadd.f32 %v785_v14, %v420_v40  ;;  %v575_v52 = vsel %vm574_vm8, %v783_v13, %v571_v44  ;;  %vm513_vm11 = vweird.f32 %v791_v34 }
 0x255   :  { %vm634_vm7 = vcmp.gt.f32.partialorder %v505_v26, 0.5  ;;  %v584_v53 = vsub.f32 1.0, %v583_v45  ;;  %v580_v54 = vsel %vm1127_vm12, %v579_v17, %v575_v52  ;;  %v510_v49 = vmul.f32 %v791_v34, %v509_v47  ;;  %vm514_vm12 = vmor %vm512_vm2, %vm513_vm11 }
 0x256   :  { %v650_v51 = vsel %vm634_vm7, 1, %v805_v36  ;;  %v425_v55 = vsel %vm424_vm9, %v785_v14, %v421_v46  ;;  %v433_v57 = vmul.f32 %v795_v50, %v1121_v12  ;;  %vm639_vm10 = vcmp.gt.f32.partialorder %v580_v54, 0.5 }
 0x257   :  { %667 = vst.msk [vmem:[%s1242_s5 + $0x38] sm:$0xff] %vm659_vm4, %v650_v51  ;;  %v430_v58 = vsel %vm1135_vm15, %v429_v29, %v425_v55  ;;  %v585_v56 = vmul.f32 %v793_v38, %v584_v53  ;;  %v655_v59 = vsel %vm639_vm10, 1, %v805_v36  ;;  %v511_v60 = vadd.f32 %v791_v34, %v510_v49  ;;  %vm589_vm15 = vmor %vm587_vm5, %vm588_vm14 }
 0x258   :  { %vm629_vm13 = vcmp.gt.f32.partialorder %v430_v58, 0.5  ;;  %v434_v62 = vsub.f32 1.0, %v433_v57  ;;  %672 = vst.msk [vmem:[%s1242_s5 + $0x60] sm:$0xff] %vm659_vm4, %v655_v59  ;;  %v594_v4 = vor.u32 1.1754944e-38, %v593_v18  ;;  %vm438_vm0 = vweird.f32 %v795_v50 }
 0x259   :  { %v645_v61 = vsel %vm629_vm13, 1, %v805_v36  ;;  %v586_v63 = vadd.f32 %v793_v38, %v585_v56  ;;  %v515_v3 = vsel %vm514_vm12, %v791_v34, %v511_v60  ;;  %vm592_vm2 = vcmp.eq.f32.partialorder %v591_v32, 8.507059e+37  ;;  %v797_v15 = vpop.eup %796 }
 0x25a   :  { %662 = vst.msk [vmem:[%s1242_s5 + $0x10] sm:$0xff] %vm659_vm4, %v645_v61  ;;  %v435_v7 = vmul.f32 %v795_v50, %v434_v62  ;;  %v520_v0 = vsel %vm1148_vm6, %v519_v37, %v515_v3  ;;  %798 = vrcp.f32 %v1161_v48  ;;  %vm437_vm3 = vweird.f32 %v1121_v12 }
 0x25b   :  { %v590_v8 = vsel %vm589_vm15, %v793_v38, %v586_v63  ;;  %vm635_vm1 = vcmp.gt.f32.partialorder %v520_v0, 0.5  ;;  %vm439_vm8 = vmor %vm437_vm3, %vm438_vm0  ;;  %v444_v1 = vor.u32 1.1754944e-38, %v443_v2  ;;  %vm442_vm5 = vcmp.eq.f32.partialorder %v441_v43, 8.507059e+37 }
 0x25c   :  { %v595_v9 = vsel %vm592_vm2, %v594_v4, %v590_v8  ;;  %v436_v10 = vadd.f32 %v795_v50, %v435_v7  ;;  %v651_v11 = vsel %vm635_vm1, 1, %v805_v36  ;;  %v369_v14 = vmul.f32 1.442695, %v338_v21 }
 0x25d   :  { %vm640_vm7 = vcmp.gt.f32.partialorder %v595_v9, 0.5  ;;  %668 = vst.msk [vmem:[%s1242_s5 + $0x40] sm:$0xff] %vm659_vm4, %v651_v11  ;;  %v523_v16 = vmul.f32 %v797_v15, %v1156_v33  ;;  %v533_v22 = vand.u32 2147483648, %v1156_v33  ;;  %vm528_vm9 = vweird.f32 %v797_v15 }
 0x25e   :  { %v656_v13 = vsel %vm640_vm7, 1, %v805_v36  ;;  %v440_v6 = vsel %vm439_vm8, %v795_v50, %v436_v10  ;;  %800 = vpow2.f32 %v369_v14  ;;  %v531_v24 = vand.u32 2147483647, %v1156_v33 }
 0x25f   :  { %673 = vst.msk [vmem:[%s1242_s5 + $0x68] sm:$0xff] %vm659_vm4, %v656_v13  ;;  %v445_v12 = vsel %vm442_vm5, %v444_v1, %v440_v6  ;;  %v524_v5 = vsub.f32 1.0, %v523_v16  ;;  %vm527_vm11 = vweird.f32 %v1156_v33  ;;  %v608_v27 = vand.u32 2147483648, %v1161_v48 }
 0x260   :  { %vm630_vm6 = vcmp.gt.f32.partialorder %v445_v12, 0.5  ;;  %v799_v17 = vpop.eup %798  ;;  %v606_v20 = vand.u32 2147483647, %v1161_v48  ;;  %vm529_vm14 = vmor %vm527_vm11, %vm528_vm9  ;;  %v534_v31 = vor.u32 1.1754944e-38, %v533_v22  ;;  %vm602_vm13 = vweird.f32 %v1161_v48 }
 0x261   :  { %v646_v19 = vsel %vm630_vm6, 1, %v805_v36  ;;  %v598_v21 = vmul.f32 %v799_v17, %v1161_v48  ;;  %v525_v23 = vmul.f32 %v797_v15, %v524_v5  ;;  %vm603_vm10 = vweird.f32 %v799_v17 }
 0x262   :  { %663 = vst.msk [vmem:[%s1242_s5 + $0x18] sm:$0xff] %vm659_vm4, %v646_v19  ;;  %vm532_vm12 = vcmp.eq.f32.partialorder %v531_v24, 8.507059e+37  ;;  %vm604_vm15 = vmor %vm602_vm13, %vm603_vm10  ;;  %v609_v18 = vor.u32 1.1754944e-38, %v608_v27  ;;  %vm607_vm2 = vcmp.eq.f32.partialorder %v606_v20, 8.507059e+37 }
 0x263   :  { %v599_v25 = vsub.f32 1.0, %v598_v21  ;;  %v526_v28 = vadd.f32 %v797_v15, %v525_v23 }
 0x264   :  { %v801_v30 = vpop.eup %800 }
 0x265   :  { %v600_v29 = vmul.f32 %v799_v17, %v599_v25  ;;  %v530_v32 = vsel %vm529_vm14, %v797_v15, %v526_v28  ;;  %v386_v35 = vadd.f32 1.0, %v801_v30 }
 0x266   :  { %v535_v37 = vsel %vm532_vm12, %v534_v31, %v530_v32 }
 0x267   :  { %v601_v34 = vadd.f32 %v799_v17, %v600_v29  ;;  %vm636_vm0 = vcmp.gt.f32.partialorder %v535_v37, 0.5  ;;  %802 = vrcp.f32 %v386_v35  ;;  %v623_v44 = vand.u32 2147483648, %v386_v35 }
 0x268   :  { %v652_v39 = vsel %vm636_vm0, 1, %v805_v36  ;;  %v621_v33 = vand.u32 2147483647, %v386_v35  ;;  %vm617_vm7 = vweird.f32 %v386_v35 }
 0x269   :  { %v605_v38 = vsel %vm604_vm15, %v799_v17, %v601_v34  ;;  %669 = vst.msk [vmem:[%s1242_s5 + $0x48] sm:$0xff] %vm659_vm4, %v652_v39  ;;  %v624_v47 = vor.u32 1.1754944e-38, %v623_v44 }
 0x26a   :  { %v610_v40 = vsel %vm607_vm2, %v609_v18, %v605_v38  ;;  %vm622_vm5 = vcmp.eq.f32.partialorder %v621_v33, 8.507059e+37 }
 0x26b   :  { %vm641_vm1 = vcmp.gt.f32.partialorder %v610_v40, 0.5 }
 0x26c   :  { %v657_v41 = vsel %vm641_vm1, 1, %v805_v36 }
 0x26d   :  { %674 = vst.msk [vmem:[%s1242_s5 + $0x70] sm:$0xff] %vm659_vm4, %v657_v41  ;;  %v803_v42 = vpop.eup %802 }
 0x26e   :  { %v613_v43 = vmul.f32 %v803_v42, %v386_v35  ;;  %vm618_vm3 = vweird.f32 %v803_v42 }
 0x26f   :  { %vm619_vm8 = vmor %vm617_vm7, %vm618_vm3 }
 0x270   :  { %v614_v26 = vsub.f32 1.0, %v613_v43 }
 0x272   :  { %v615_v45 = vmul.f32 %v803_v42, %v614_v26 }
 0x274   :  { %v616_v46 = vadd.f32 %v803_v42, %v615_v45 }
 0x276   :  { %v620_v48 = vsel %vm619_vm8, %v803_v42, %v616_v46 }
 0x277   :  { %v625_v50 = vsel %vm622_vm5, %v624_v47, %v620_v48 }
 0x278   :  { %vm642_vm6 = vcmp.gt.f32.partialorder %v625_v50, 0.5 }
 0x279   :  { %v658_v51 = vsel %vm642_vm6, 1, %v805_v36 }
 0x27a   :  { %675 = vst.msk [vmem:[%s1242_s5 + $0x78] sm:$0xff] %vm659_vm4, %v658_v51 }

</bundles_post_ra>
